<compile_context>
chip_gen: v7x
topology: tpu7x:2x2x1
jax: 0.10.0
libtpu: 0.0.40
codegen_flags: <defaults>
</compile_context>

<pallas_src>
import functools

import jax
import jax.numpy as jnp
from jax.experimental import pallas as pl
from jax.experimental.pallas import tpu as pltpu


# ---------------------------------------------------------------------------
# Fused multi-step kernel
# ---------------------------------------------------------------------------
def _make_fused_decoder_kernel(n_layers, hid_dim, out_dim, batch, d0, v_pad):
    H, V, B, L = hid_dim, out_dim, batch, n_layers

    def kernel(tok_ref,        # VMEM (1, B, 1) int32   per-step token ids
               state_in_ref,   # VMEM (B, 2*L*H) f32    initial packed state
               w_ref,          # VMEM (L, d0+H, 4H) bf16  [W_ih.T(pad); W_hh.T]
               b_ref,          # VMEM (L, 1, 4H) f32    b_ih + b_hh
               fcw_ref,        # VMEM (H, v_pad) bf16   fc weight.T (lane-padded)
               fcb_ref,        # VMEM (1, v_pad) f32    fc bias (lane-padded)
               pred_ref,       # out  (1, B, v_pad) f32 per-step prediction
               state_out_ref,  # out  (B, 2*L*H) f32    final packed state
               carry_ref):     # VMEM scratch (B, 2*L*H) f32 cross-step carry
        t = pl.program_id(0)

        @pl.when(t == 0)
        def _():
            carry_ref[...] = state_in_ref[...]

        state = carry_ref[...]

        # Layer-0 input: one-hot built on the VPU, zero-padded to d0 lanes.
        tok = tok_ref[0]                                             # (B, 1) i32
        lane = jax.lax.broadcasted_iota(jnp.int32, (B, d0), 1)
        x = (lane == tok).astype(jnp.float32)                        # (B, d0)

        new_state = []
        for l in range(L):
            h_prev = state[:, (2 * l) * H:(2 * l + 1) * H]           # (B, H)
            c_prev = state[:, (2 * l + 1) * H:(2 * l + 2) * H]       # (B, H)

            if l > 0 and d0 > H:   # only needed when V > H
                x = jnp.concatenate(
                    [x, jnp.zeros((B, d0 - H), jnp.float32)], axis=-1)

            # One fused MXU matmul per layer (bf16 operands, f32 accumulate).
            xh = jnp.concatenate([x, h_prev], axis=-1).astype(jnp.bfloat16)
            gates = (jnp.dot(xh, w_ref[l],
                             preferred_element_type=jnp.float32)
                     + b_ref[l])                                     # (B, 4H)

            # Single EUP pass over the full gates vreg; the g-gate tanh is
            # 2*sigmoid(2x) - 1 (factor 2 pre-folded into W/b at pack time).
            s = jax.nn.sigmoid(gates)
            i_g = s[:, 0 * H:1 * H]
            f_g = s[:, 1 * H:2 * H]
            g_g = 2.0 * s[:, 2 * H:3 * H] - 1.0
            o_g = s[:, 3 * H:4 * H]

            c_new = f_g * c_prev + i_g * g_g
            h_new = o_g * jnp.tanh(c_new)
            new_state += [h_new, c_new]
            x = h_new                                                # next layer

        packed_state = jnp.concatenate(new_state, axis=-1)           # (B, 2LH)
        carry_ref[...] = packed_state

        @pl.when(t == pl.num_programs(0) - 1)
        def _():
            state_out_ref[...] = packed_state

        # Lane-dense (multiple-of-128) unmasked prediction store.
        pred_ref[0] = (jnp.dot(x.astype(jnp.bfloat16), fcw_ref[...],
                               preferred_element_type=jnp.float32)
                       + fcb_ref[...])

    return kernel


# ---------------------------------------------------------------------------
# Wrapper-side packing (done ONCE per parameter set, not per step)
# ---------------------------------------------------------------------------
def pack_decoder_params(params, *, output_dim, hid_dim, n_layers):
    H, V = hid_dim, output_dim
    d0 = max(V, H)
    v_pad = ((V + 127) // 128) * 128
    # Fold tanh(x) = 2*sigmoid(2x)-1 into the g-gate columns (exact identity).
    g_scale = jnp.concatenate([jnp.ones((2 * H,), jnp.float32),
                               2.0 * jnp.ones((H,), jnp.float32),
                               jnp.ones((H,), jnp.float32)])
    w_list, b_list = [], []
    for l in range(n_layers):
        w_ih_t = params[f"w_ih_{l}"].T.astype(jnp.float32)            # (in_l, 4H)
        in_l = w_ih_t.shape[0]
        if in_l < d0:
            w_ih_t = jnp.concatenate(
                [w_ih_t, jnp.zeros((d0 - in_l, 4 * H), jnp.float32)], axis=0)
        w_hh_t = params[f"w_hh_{l}"].T.astype(jnp.float32)            # (H, 4H)
        w = jnp.concatenate([w_ih_t, w_hh_t], axis=0) * g_scale[None, :]
        w_list.append(w.astype(jnp.bfloat16))                         # (d0+H, 4H)
        b = (params[f"b_ih_{l}"] + params[f"b_hh_{l}"]).astype(jnp.float32)
        b_list.append((b * g_scale).reshape(1, 4 * H))
    fc_w = params["w_fc"].T.astype(jnp.float32)                        # (H, V)
    fc_b = params["b_fc"].reshape(1, V).astype(jnp.float32)
    if v_pad > V:
        fc_w = jnp.concatenate(
            [fc_w, jnp.zeros((H, v_pad - V), jnp.float32)], axis=1)
        fc_b = jnp.concatenate(
            [fc_b, jnp.zeros((1, v_pad - V), jnp.float32)], axis=1)
    return {
        "w_stack": jnp.stack(w_list),        # (L, d0+H, 4H) bf16
        "b_stack": jnp.stack(b_list),        # (L, 1, 4H)    f32
        "fc_w": fc_w.astype(jnp.bfloat16),   # (H, v_pad)    bf16
        "fc_b": fc_b,                        # (1, v_pad)    f32
    }


def pack_state(hidden, cell):
    """(n_layers,B,H)x2 -> lane-dense (B, n_layers*2*H): [h0|c0|h1|c1|...]."""
    n_l, B, H = hidden.shape
    st = jnp.stack([hidden, cell], axis=1)            # (L, 2, B, H)
    st = jnp.transpose(st, (2, 0, 1, 3))              # (B, L, 2, H)
    return st.reshape(B, n_l * 2 * H).astype(jnp.float32)


def unpack_state(state, n_layers, hid_dim):
    B = state.shape[0]
    st = state.reshape(B, n_layers, 2, hid_dim)
    st = jnp.transpose(st, (1, 2, 0, 3))              # (L, 2, B, H)
    return st[:, 0], st[:, 1]


# ---------------------------------------------------------------------------
# Fused decode core: grid=(T,), weights resident, state carried in VMEM
# ---------------------------------------------------------------------------
def _decode_core(tokens, state, packed, *, output_dim, hid_dim, n_layers):
    T, B = tokens.shape
    H, V, L = hid_dim, output_dim, n_layers
    d0 = max(V, H)
    v_pad = ((V + 127) // 128) * 128

    def const_map(rank):
        return lambda t: (0,) * rank

    grid_spec = pltpu.PrefetchScalarGridSpec(
        num_scalar_prefetch=0,
        grid=(T,),
        in_specs=[
            pl.BlockSpec((1, B, 1), lambda t: (t, 0, 0)),        # per-step tokens
            pl.BlockSpec((B, 2 * L * H), const_map(2)),          # init state (resident)
            pl.BlockSpec((L, d0 + H, 4 * H), const_map(3)),      # LSTM weights (resident)
            pl.BlockSpec((L, 1, 4 * H), const_map(3)),           # LSTM biases (resident)
            pl.BlockSpec((H, v_pad), const_map(2)),              # fc weight (resident)
            pl.BlockSpec((1, v_pad), const_map(2)),              # fc bias (resident)
        ],
        out_specs=(
            pl.BlockSpec((1, B, v_pad), lambda t: (t, 0, 0)),    # per-step prediction
            pl.BlockSpec((B, 2 * L * H), const_map(2)),          # final packed state
        ),
        scratch_shapes=[pltpu.VMEM((B, 2 * L * H), jnp.float32)],
    )

    pred_pad, state_out = pl.pallas_call(
        _make_fused_decoder_kernel(L, H, V, B, d0, v_pad),
        grid_spec=grid_spec,
        out_shape=(
            jax.ShapeDtypeStruct((T, B, v_pad), jnp.float32),
            jax.ShapeDtypeStruct((B, 2 * L * H), jnp.float32),
        ),
        compiler_params=pltpu.CompilerParams(
            dimension_semantics=("arbitrary",)),
    )(tokens.reshape(T, B, 1).astype(jnp.int32), state,
      packed["w_stack"], packed["b_stack"], packed["fc_w"], packed["fc_b"])

    return pred_pad[..., :V], state_out


@functools.partial(jax.jit, static_argnames=("output_dim", "hid_dim", "n_layers"))
def decoder_decode_steps(tokens, state, packed, *, output_dim, hid_dim, n_layers):
    """Multi-step teacher-forced decode. tokens: (T,B); state: packed (B,2LH)."""
    return _decode_core(tokens, state, packed, output_dim=output_dim,
                        hid_dim=hid_dim, n_layers=n_layers)


@functools.partial(jax.jit, static_argnames=("output_dim", "hid_dim", "n_layers"))
def decoder_forward(src, hidden, cell, packed, *, output_dim, hid_dim, n_layers):
    """Single step with the original module interface (T=1 of the fused kernel)."""
    state = pack_state(hidden, cell)
    preds, state_out = _decode_core(src[None, :], state, packed,
                                    output_dim=output_dim, hid_dim=hid_dim,
                                    n_layers=n_layers)
    h_new, c_new = unpack_state(state_out, n_layers, hid_dim)
    return preds[0], h_new, c_new


# ---------------------------------------------------------------------------
# Pure-JAX reference (mirrors torch.nn.LSTM single step + Linear, f32)
# ---------------------------------------------------------------------------
def decoder_reference(src, hidden, cell, params, *, output_dim, hid_dim, n_layers):
    H, V = hid_dim, output_dim
    x = jax.nn.one_hot(src, V, dtype=jnp.float32)
    h_out, c_out = [], []
    for l in range(n_layers):
        w_ih, w_hh = params[f"w_ih_{l}"], params[f"w_hh_{l}"]
        b = params[f"b_ih_{l}"] + params[f"b_hh_{l}"]
        gates = x @ w_ih.T + hidden[l] @ w_hh.T + b
        i = jax.nn.sigmoid(gates[:, :H])
        f = jax.nn.sigmoid(gates[:, H:2 * H])
        g = jnp.tanh(gates[:, 2 * H:3 * H])
        o = jax.nn.sigmoid(gates[:, 3 * H:])
        c_new = f * cell[l] + i * g
        h_new = o * jnp.tanh(c_new)
        h_out.append(h_new)
        c_out.append(c_new)
        x = h_new
    pred = x @ params["w_fc"].T + params["b_fc"]
    return pred, jnp.stack(h_out), jnp.stack(c_out)


def decoder_reference_rollout(tokens, hidden, cell, params, **dims):
    preds = []
    for t in range(tokens.shape[0]):
        p, hidden, cell = decoder_reference(tokens[t], hidden, cell, params, **dims)
        preds.append(p)
    return jnp.stack(preds), hidden, cell


def init_params(key, output_dim, hid_dim, n_layers):
    """Deterministic synthetic init, PyTorch-style U(-1/sqrt(H), 1/sqrt(H))."""
    H, V = hid_dim, output_dim
    k = 1.0 / jnp.sqrt(H)
    params = {}
    for l in range(n_layers):
        in_l = V if l == 0 else H
        key, k1, k2, k3, k4 = jax.random.split(key, 5)
        params[f"w_ih_{l}"] = jax.random.uniform(k1, (4 * H, in_l), jnp.float32, -k, k)
        params[f"w_hh_{l}"] = jax.random.uniform(k2, (4 * H, H), jnp.float32, -k, k)
        params[f"b_ih_{l}"] = jax.random.uniform(k3, (4 * H,), jnp.float32, -k, k)
        params[f"b_hh_{l}"] = jax.random.uniform(k4, (4 * H,), jnp.float32, -k, k)
    key, k5, k6 = jax.random.split(key, 3)
    params["w_fc"] = jax.random.uniform(k5, (V, H), jnp.float32, -k, k)
    params["b_fc"] = jax.random.uniform(k6, (V,), jnp.float32, -k, k)
    return params


if __name__ == "__main__":
    OUTPUT_DIM = 16   # vocab size
    HID_DIM = 32
    N_LAYERS = 2
    BATCH = 8
    T_STEPS = 8

    dims = dict(output_dim=OUTPUT_DIM, hid_dim=HID_DIM, n_layers=N_LAYERS)
    # bf16 MXU operands (per perf review) loosen accuracy vs the f32 reference.
    ATOL = 5e-2

    key = jax.random.PRNGKey(0)
    key, k_src, k_tok, k_h, k_c, k_p = jax.random.split(key, 6)

    src = jax.random.randint(k_src, (BATCH,), 0, OUTPUT_DIM, dtype=jnp.int32)
    tokens = jax.random.randint(k_tok, (T_STEPS, BATCH), 0, OUTPUT_DIM, dtype=jnp.int32)
    hidden = jax.random.normal(k_h, (N_LAYERS, BATCH, HID_DIM), jnp.float32)
    cell = jax.random.normal(k_c, (N_LAYERS, BATCH, HID_DIM), jnp.float32)
    params = init_params(k_p, OUTPUT_DIM, HID_DIM, N_LAYERS)

    # pack once (hoisted out of the decode loop entirely)
    packed = pack_decoder_params(params, **dims)

    # --- single-step: original module forward semantics --------------------
    pred, h1, c1 = decoder_forward(src, hidden, cell, packed, **dims)
    jax.block_until_ready((pred, h1, c1))
    pred_r, h1_r, c1_r = decoder_reference(src, hidden, cell, params, **dims)

    assert pred.shape == (BATCH, OUTPUT_DIM)
    assert h1.shape == (N_LAYERS, BATCH, HID_DIM)
    assert c1.shape == (N_LAYERS, BATCH, HID_DIM)
    assert jnp.allclose(pred, pred_r, atol=ATOL), "single-step prediction mismatch"
    assert jnp.allclose(h1, h1_r, atol=ATOL), "single-step hidden mismatch"
    assert jnp.allclose(c1, c1_r, atol=ATOL), "single-step cell mismatch"

    # --- fused multi-step rollout: one pallas_call, grid=(T,) --------------
    state0 = pack_state(hidden, cell)                 # packed ONCE for the rollout
    preds, state_T = decoder_decode_steps(tokens, state0, packed, **dims)
    jax.block_until_ready((preds, state_T))
    hT, cT = unpack_state(state_T, N_LAYERS, HID_DIM) # unpacked ONCE after the rollout

    preds_r, hT_r, cT_r = decoder_reference_rollout(tokens, hidden, cell, params, **dims)

    assert preds.shape == (T_STEPS, BATCH, OUTPUT_DIM)
    assert jnp.allclose(preds, preds_r, atol=ATOL), "rollout prediction mismatch"
    assert jnp.allclose(hT, hT_r, atol=ATOL), "rollout hidden mismatch"
    assert jnp.allclose(cT, cT_r, atol=ATOL), "rollout cell mismatch"

    print("KERNEL_OK")
</pallas_src>

<mosaic_0001>
module attributes {stable_mosaic.version = 11 : i64} {
  func.func @kernel(%arg0: i32, %arg1: memref<1x8x1xi32, #tpu.memory_space<vmem>>, %arg2: memref<8x128xf32, #tpu.memory_space<vmem>>, %arg3: memref<2x64x128xbf16, #tpu.memory_space<vmem>>, %arg4: memref<2x1x128xf32, #tpu.memory_space<vmem>>, %arg5: memref<32x128xbf16, #tpu.memory_space<vmem>>, %arg6: memref<1x128xf32, #tpu.memory_space<vmem>>, %arg7: memref<1x8x128xf32, #tpu.memory_space<vmem>>, %arg8: memref<8x128xf32, #tpu.memory_space<vmem>>, %arg9: memref<8x128xf32, #tpu.memory_space<vmem>>) attributes {dimension_semantics = [#tpu.dimension_semantics<arbitrary>], iteration_bounds = array<i64: 1>, scalar_prefetch = 0 : i64, scratch_operands = 1 : i64, tpu.core_type = #tpu.core_type<tc>, window_params = [{transform_indices = @transform_0, window_bounds = array<i64: 1, 8, 1>}, {pipeline_mode = #tpu.pipeline_mode<synchronous>, transform_indices = @transform_1, window_bounds = array<i64: 8, 128>}, {pipeline_mode = #tpu.pipeline_mode<synchronous>, transform_indices = @transform_2, window_bounds = array<i64: 2, 64, 128>}, {pipeline_mode = #tpu.pipeline_mode<synchronous>, transform_indices = @transform_3, window_bounds = array<i64: 2, 1, 128>}, {pipeline_mode = #tpu.pipeline_mode<synchronous>, transform_indices = @transform_4, window_bounds = array<i64: 32, 128>}, {pipeline_mode = #tpu.pipeline_mode<synchronous>, transform_indices = @transform_5, window_bounds = array<i64: 1, 128>}, {transform_indices = @transform_6, window_bounds = array<i64: 1, 8, 128>}, {pipeline_mode = #tpu.pipeline_mode<synchronous>, transform_indices = @transform_7, window_bounds = array<i64: 8, 128>}]} {
    %c0_i32 = arith.constant 0 : i32
    %0 = arith.cmpi eq, %arg0, %c0_i32 : i32
    %1 = arith.extui %0 : i1 to i32
    %c0_i32_0 = arith.constant 0 : i32
    %2 = arith.cmpi ne, %1, %c0_i32_0 : i32
    scf.if %2 {
      %c0_35 = arith.constant 0 : index
      %c0_36 = arith.constant 0 : index
      %83 = vector.load %arg2[%c0_35, %c0_36] : memref<8x128xf32, #tpu.memory_space<vmem>>, vector<8x128xf32>
      %c0_37 = arith.constant 0 : index
      %c0_38 = arith.constant 0 : index
      %84 = vector.load %arg9[%c0_37, %c0_38] : memref<8x128xf32, #tpu.memory_space<vmem>>, vector<8x128xf32>
      tpu.vector_store %arg9[%c0_37, %c0_38], %83 {strides = array<i32>} : memref<8x128xf32, #tpu.memory_space<vmem>>, vector<8x128xf32>,
    } else {
    }
    %c0 = arith.constant 0 : index
    %c0_1 = arith.constant 0 : index
    %3 = vector.load %arg9[%c0, %c0_1] : memref<8x128xf32, #tpu.memory_space<vmem>>, vector<8x128xf32>
    %c0_2 = arith.constant 0 : index
    %c0_3 = arith.constant 0 : index
    %c0_4 = arith.constant 0 : index
    %4 = vector.load %arg1[%c0_2, %c0_3, %c0_4] : memref<1x8x1xi32, #tpu.memory_space<vmem>>, vector<1x8x1xi32>
    %5 = vector.shape_cast %4 : vector<1x8x1xi32> to vector<8x1xi32>
    %6 = tpu.iota {dimensions = array<i32: 1>} : vector<8x32xi32>
    %7 = vector.broadcast %5 : vector<8x1xi32> to vector<8x32xi32>
    %8 = arith.cmpi eq, %6, %7 : vector<8x32xi32>
    %9 = arith.extui %8 : vector<8x32xi1> to vector<8x32xi32>
    %10 = arith.sitofp %9 : vector<8x32xi32> to vector<8x32xf32>
    %11 = vector.extract_strided_slice %3 {offsets = [0, 0], sizes = [8, 32], strides = [1, 1]} : vector<8x128xf32> to vector<8x32xf32>
    %12 = vector.extract_strided_slice %3 {offsets = [0, 32], sizes = [8, 32], strides = [1, 1]} : vector<8x128xf32> to vector<8x32xf32>
    %13 = tpu.concatenate %10, %11 in 1 : vector<8x32xf32>, vector<8x32xf32> -> vector<8x64xf32>
    %14 = arith.truncf %13 : vector<8x64xf32> to vector<8x64xbf16>
    %c0_5 = arith.constant 0 : index
    %c0_6 = arith.constant 0 : index
    %c0_7 = arith.constant 0 : index
    %15 = vector.load %arg3[%c0_5, %c0_6, %c0_7] : memref<2x64x128xbf16, #tpu.memory_space<vmem>>, vector<1x64x128xbf16>
    %16 = vector.shape_cast %15 : vector<1x64x128xbf16> to vector<64x128xbf16>
    %cst = arith.constant dense<0.000000e+00> : vector<8x128xf32>
    %17 = tpu.matmul %14, %16, %cst {dimension_numbers = #tpu.dot_dimension_numbers<[1], [0], [0], [1], [0, 0, 1, 1], [], []>} : vector<8x64xbf16>, vector<64x128xbf16>, vector<8x128xf32> -> vector<8x128xf32>
    %c0_8 = arith.constant 0 : index
    %c0_9 = arith.constant 0 : index
    %c0_10 = arith.constant 0 : index
    %18 = vector.load %arg4[%c0_8, %c0_9, %c0_10] : memref<2x1x128xf32, #tpu.memory_space<vmem>>, vector<1x1x128xf32>
    %19 = vector.shape_cast %18 : vector<1x1x128xf32> to vector<1x128xf32>
    %20 = vector.broadcast %19 : vector<1x128xf32> to vector<8x128xf32>
    %21 = arith.addf %17, %20 : vector<8x128xf32>
    %22 = arith.negf %21 : vector<8x128xf32>
    %23 = math.exp %22 : vector<8x128xf32>
    %cst_11 = arith.constant 1.000000e+00 : f32
    %24 = vector.broadcast %cst_11 : f32 to vector<8x128xf32>
    %25 = arith.addf %24, %23 : vector<8x128xf32>
    %26 = arith.divf %24, %25 : vector<8x128xf32>
    %27 = vector.extract_strided_slice %26 {offsets = [0, 0], sizes = [8, 32], strides = [1, 1]} : vector<8x128xf32> to vector<8x32xf32>
    %28 = vector.extract_strided_slice %26 {offsets = [0, 32], sizes = [8, 32], strides = [1, 1]} : vector<8x128xf32> to vector<8x32xf32>
    %29 = vector.extract_strided_slice %26 {offsets = [0, 64], sizes = [8, 32], strides = [1, 1]} : vector<8x128xf32> to vector<8x32xf32>
    %cst_12 = arith.constant 2.000000e+00 : f32
    %30 = vector.broadcast %cst_12 : f32 to vector<8x32xf32>
    %31 = arith.mulf %30, %29 : vector<8x32xf32>
    %cst_13 = arith.constant 1.000000e+00 : f32
    %32 = vector.broadcast %cst_13 : f32 to vector<8x32xf32>
    %33 = arith.subf %31, %32 : vector<8x32xf32>
    %34 = vector.extract_strided_slice %26 {offsets = [0, 96], sizes = [8, 32], strides = [1, 1]} : vector<8x128xf32> to vector<8x32xf32>
    %35 = arith.mulf %28, %12 : vector<8x32xf32>
    %36 = arith.mulf %27, %33 : vector<8x32xf32>
    %37 = arith.addf %35, %36 : vector<8x32xf32>
    %38 = math.tanh %37 : vector<8x32xf32>
    %39 = arith.mulf %34, %38 : vector<8x32xf32>
    %40 = vector.extract_strided_slice %3 {offsets = [0, 64], sizes = [8, 32], strides = [1, 1]} : vector<8x128xf32> to vector<8x32xf32>
    %41 = vector.extract_strided_slice %3 {offsets = [0, 96], sizes = [8, 32], strides = [1, 1]} : vector<8x128xf32> to vector<8x32xf32>
    %42 = tpu.concatenate %39, %40 in 1 : vector<8x32xf32>, vector<8x32xf32> -> vector<8x64xf32>
    %43 = arith.truncf %42 : vector<8x64xf32> to vector<8x64xbf16>
    %c1 = arith.constant 1 : index
    %c0_14 = arith.constant 0 : index
    %c0_15 = arith.constant 0 : index
    %44 = vector.load %arg3[%c1, %c0_14, %c0_15] : memref<2x64x128xbf16, #tpu.memory_space<vmem>>, vector<1x64x128xbf16>
    %45 = vector.shape_cast %44 : vector<1x64x128xbf16> to vector<64x128xbf16>
    %cst_16 = arith.constant dense<0.000000e+00> : vector<8x128xf32>
    %46 = tpu.matmul %43, %45, %cst_16 {dimension_numbers = #tpu.dot_dimension_numbers<[1], [0], [0], [1], [0, 0, 1, 1], [], []>} : vector<8x64xbf16>, vector<64x128xbf16>, vector<8x128xf32> -> vector<8x128xf32>
    %c1_17 = arith.constant 1 : index
    %c0_18 = arith.constant 0 : index
    %c0_19 = arith.constant 0 : index
    %47 = vector.load %arg4[%c1_17, %c0_18, %c0_19] : memref<2x1x128xf32, #tpu.memory_space<vmem>>, vector<1x1x128xf32>
    %48 = vector.shape_cast %47 : vector<1x1x128xf32> to vector<1x128xf32>
    %49 = vector.broadcast %48 : vector<1x128xf32> to vector<8x128xf32>
    %50 = arith.addf %46, %49 : vector<8x128xf32>
    %51 = arith.negf %50 : vector<8x128xf32>
    %52 = math.exp %51 : vector<8x128xf32>
    %cst_20 = arith.constant 1.000000e+00 : f32
    %53 = vector.broadcast %cst_20 : f32 to vector<8x128xf32>
    %54 = arith.addf %53, %52 : vector<8x128xf32>
    %55 = arith.divf %53, %54 : vector<8x128xf32>
    %56 = vector.extract_strided_slice %55 {offsets = [0, 0], sizes = [8, 32], strides = [1, 1]} : vector<8x128xf32> to vector<8x32xf32>
    %57 = vector.extract_strided_slice %55 {offsets = [0, 32], sizes = [8, 32], strides = [1, 1]} : vector<8x128xf32> to vector<8x32xf32>
    %58 = vector.extract_strided_slice %55 {offsets = [0, 64], sizes = [8, 32], strides = [1, 1]} : vector<8x128xf32> to vector<8x32xf32>
    %cst_21 = arith.constant 2.000000e+00 : f32
    %59 = vector.broadcast %cst_21 : f32 to vector<8x32xf32>
    %60 = arith.mulf %59, %58 : vector<8x32xf32>
    %cst_22 = arith.constant 1.000000e+00 : f32
    %61 = vector.broadcast %cst_22 : f32 to vector<8x32xf32>
    %62 = arith.subf %60, %61 : vector<8x32xf32>
    %63 = vector.extract_strided_slice %55 {offsets = [0, 96], sizes = [8, 32], strides = [1, 1]} : vector<8x128xf32> to vector<8x32xf32>
    %64 = arith.mulf %57, %41 : vector<8x32xf32>
    %65 = arith.mulf %56, %62 : vector<8x32xf32>
    %66 = arith.addf %64, %65 : vector<8x32xf32>
    %67 = math.tanh %66 : vector<8x32xf32>
    %68 = arith.mulf %63, %67 : vector<8x32xf32>
    %69 = tpu.concatenate %39, %37, %68, %66 in 1 : vector<8x32xf32>, vector<8x32xf32>, vector<8x32xf32>, vector<8x32xf32> -> vector<8x128xf32>
    %c0_23 = arith.constant 0 : index
    %c0_24 = arith.constant 0 : index
    %70 = vector.load %arg9[%c0_23, %c0_24] : memref<8x128xf32, #tpu.memory_space<vmem>>, vector<8x128xf32>
    tpu.vector_store %arg9[%c0_23, %c0_24], %69 {strides = array<i32>} : memref<8x128xf32, #tpu.memory_space<vmem>>, vector<8x128xf32>,
    %c0_i32_25 = arith.constant 0 : i32
    %71 = arith.cmpi eq, %arg0, %c0_i32_25 : i32
    %72 = arith.extui %71 : i1 to i32
    %c0_i32_26 = arith.constant 0 : i32
    %73 = arith.cmpi ne, %72, %c0_i32_26 : i32
    scf.if %73 {
      %c0_35 = arith.constant 0 : index
      %c0_36 = arith.constant 0 : index
      %83 = vector.load %arg8[%c0_35, %c0_36] : memref<8x128xf32, #tpu.memory_space<vmem>>, vector<8x128xf32>
      tpu.vector_store %arg8[%c0_35, %c0_36], %69 {strides = array<i32>} : memref<8x128xf32, #tpu.memory_space<vmem>>, vector<8x128xf32>,
    } else {
    }
    %74 = arith.truncf %68 : vector<8x32xf32> to vector<8x32xbf16>
    %c0_27 = arith.constant 0 : index
    %c0_28 = arith.constant 0 : index
    %75 = vector.load %arg5[%c0_27, %c0_28] : memref<32x128xbf16, #tpu.memory_space<vmem>>, vector<32x128xbf16>
    %cst_29 = arith.constant dense<0.000000e+00> : vector<8x128xf32>
    %76 = tpu.matmul %74, %75, %cst_29 {dimension_numbers = #tpu.dot_dimension_numbers<[1], [0], [0], [1], [0, 0, 1, 1], [], []>} : vector<8x32xbf16>, vector<32x128xbf16>, vector<8x128xf32> -> vector<8x128xf32>
    %c0_30 = arith.constant 0 : index
    %c0_31 = arith.constant 0 : index
    %77 = vector.load %arg6[%c0_30, %c0_31] : memref<1x128xf32, #tpu.memory_space<vmem>>, vector<1x128xf32>
    %78 = vector.broadcast %77 : vector<1x128xf32> to vector<8x128xf32>
    %79 = arith.addf %76, %78 : vector<8x128xf32>
    %c0_32 = arith.constant 0 : index
    %c0_33 = arith.constant 0 : index
    %c0_34 = arith.constant 0 : index
    %80 = vector.load %arg7[%c0_32, %c0_33, %c0_34] : memref<1x8x128xf32, #tpu.memory_space<vmem>>, vector<1x8x128xf32>
    %81 = vector.shape_cast %80 : vector<1x8x128xf32> to vector<8x128xf32>
    %82 = vector.shape_cast %79 : vector<8x128xf32> to vector<1x8x128xf32>
    tpu.vector_store %arg7[%c0_32, %c0_33, %c0_34], %82 {strides = array<i32>} : memref<1x8x128xf32, #tpu.memory_space<vmem>>, vector<1x8x128xf32>,
    return
  }
  func.func @transform_0(%arg0: i32) -> (i32, i32, i32) {
    %c0_i32 = arith.constant 0 : i32
    %c0_i32_0 = arith.constant 0 : i32
    %c0_i32_1 = arith.constant 0 : i32
    return %arg0, %c0_i32, %c0_i32_0 : i32, i32, i32
  }
  func.func @transform_1(%arg0: i32) -> (i32, i32) {
    %c0_i32 = arith.constant 0 : i32
    %c0_i32_0 = arith.constant 0 : i32
    %c0_i32_1 = arith.constant 0 : i32
    return %c0_i32, %c0_i32_0 : i32, i32
  }
  func.func @transform_2(%arg0: i32) -> (i32, i32, i32) {
    %c0_i32 = arith.constant 0 : i32
    %c0_i32_0 = arith.constant 0 : i32
    %c0_i32_1 = arith.constant 0 : i32
    %c0_i32_2 = arith.constant 0 : i32
    return %c0_i32, %c0_i32_0, %c0_i32_1 : i32, i32, i32
  }
  func.func @transform_3(%arg0: i32) -> (i32, i32, i32) {
    %c0_i32 = arith.constant 0 : i32
    %c0_i32_0 = arith.constant 0 : i32
    %c0_i32_1 = arith.constant 0 : i32
    %c0_i32_2 = arith.constant 0 : i32
    return %c0_i32, %c0_i32_0, %c0_i32_1 : i32, i32, i32
  }
  func.func @transform_4(%arg0: i32) -> (i32, i32) {
    %c0_i32 = arith.constant 0 : i32
    %c0_i32_0 = arith.constant 0 : i32
    %c0_i32_1 = arith.constant 0 : i32
    return %c0_i32, %c0_i32_0 : i32, i32
  }
  func.func @transform_5(%arg0: i32) -> (i32, i32) {
    %c0_i32 = arith.constant 0 : i32
    %c0_i32_0 = arith.constant 0 : i32
    %c0_i32_1 = arith.constant 0 : i32
    return %c0_i32, %c0_i32_0 : i32, i32
  }
  func.func @transform_6(%arg0: i32) -> (i32, i32, i32) {
    %c0_i32 = arith.constant 0 : i32
    %c0_i32_0 = arith.constant 0 : i32
    %c0_i32_1 = arith.constant 0 : i32
    return %arg0, %c0_i32, %c0_i32_0 : i32, i32, i32
  }
  func.func @transform_7(%arg0: i32) -> (i32, i32) {
    %c0_i32 = arith.constant 0 : i32
    %c0_i32_0 = arith.constant 0 : i32
    %c0_i32_1 = arith.constant 0 : i32
    return %c0_i32, %c0_i32_0 : i32, i32
  }
}

</mosaic_0001>

<bundles_post_ra>
// kernel: decoder_forward.1
= control target key start
LH: loop header
LB: loop body
LE: loop exit
PB: predicated region body
PF: predicated region fallthrough
CT: control target
= control target key end

     0   :  { %v478_v0 = vmov 0   ;;  %v479_v2 = vmov 0.0   ;;  %vm481_vm0 = vmmov 0   ;;  %v34_v8 = vlaneseq  ;;  %s482_s14 = smov 64   ;;  %s483_s21 = smov 96   ;;  %s622_s0 = inlined_call_operand.vmem [shape: s32[1,8,1], index: 0, kind: input, shape index: {}]   ;;  %s623_s1 = inlined_call_operand.vmem [shape: f32[8,128], index: 1, kind: input, shape index: {}]   ;;  %s624_s2 = inlined_call_operand.vmem [shape: bf16[2,64,128], index: 2, kind: input, shape index: {}]   ;;  %s625_s3 = inlined_call_operand.vmem [shape: f32[2,1,128], index: 3, kind: input, shape index: {}]   ;;  %s626_s4 = inlined_call_operand.vmem [shape: bf16[32,128], index: 4, kind: input, shape index: {}]   ;;  %s627_s7 = inlined_call_operand.vmem [shape: f32[8,128], index: 7, kind: output, shape index: {1}]   ;;  %s628_s5 = inlined_call_operand.vmem [shape: f32[1,128], index: 5, kind: input, shape index: {}]   ;;  %s629_s6 = inlined_call_operand.vmem [shape: f32[1,8,128], index: 6, kind: output, shape index: {0}]  }
   0x1   :  { %455 = vset.pattern.permute.xlu0 %v478_v0  ;;  %v33_v1 = vld [vmem:[%s622_s0] sm:$0xff]  ;;  %417 = vmatprep.subr.bf16.mxu0 %v479_v2  ;;  %v457_v5 = vld [vmem:[%s624_s2 + $0x8] sm:$0xff]   ;;  %s480_s0 = smov 32   ;;  %v458_v6 = vld [vmem:[%s624_s2 + $0x10] sm:$0xff]   ;;  %vm46_vm2 = vcmask 261120   ;;  %vm88_vm3 = vcmask 523264  }
   0x2   :  { %37 = vperm.xlu0 %455, %v33_v1   ;;  %v456_v3 = vld [vmem:[%s624_s2] sm:$0xff]   ;;  %429 = vmatprep.subr.bf16.mxu1 %v479_v2  ;;  %v459_v7 = vld [vmem:[%s624_s2 + $0x18] sm:$0xff]   ;;  %v35_v9 = vand.u32 127, %v34_v8  ;;  %v461_v33 = vld [vmem:[%s624_s2 + $0x28] sm:$0xff]   ;;  %vm288_vm4 = vcmask 785408  }
   0x3   :  { %v535_v4 = vld [vmem:[%s623_s1] sm:$0xff]  ;;  %418 = vmatpush3.bf16.msra.mxu0 %v456_v3  ;;  %425 = vmatprep.mubr.msk.bf16.mxu0 %vm481_vm0, %v479_v2  ;;  %v462_v34 = vld [vmem:[%s624_s2 + $0x30] sm:$0xff]   ;;  %v463_v36 = vld [vmem:[%s624_s2 + $0x38] sm:$0xff]  }
   0x4   :  { %419 = vmatprep.subr.bf16.mxu0 %v479_v2  ;;  %437 = vmatprep.mubr.msk.bf16.mxu1 %vm481_vm0, %v479_v2  ;;  %v375_v15 = vld [vmem:[%s625_s3] ss:$0 sm:$0xff]  ;;  %v392_v43 = vld [vmem:[%s625_s3 + $0x1] ss:$0 sm:$0xff]  ;;  %v465_v62 = vld [vmem:[%s626_s4 + $0x8] sm:$0xff]  }
   0x5   :  { %v460_v32 = vld [vmem:[%s624_s2 + $0x20] sm:$0xff]  }
   0x6   :  { %43 = vrot.lane.b32.xlu0 %v535_v4, %s480_s0  ;;  %430 = vmatpush3.bf16.msra.mxu1 %v460_v32  ;;  %v464_v61 = vld [vmem:[%s626_s4] sm:$0xff]  }
   0x7   :  { %420 = vmatpush3.bf16.msra.mxu0 %v457_v5  ;;  %431 = vmatprep.subr.bf16.mxu1 %v479_v2 }
   0x8   :  { %421 = vmatprep.subr.bf16.mxu0 %v479_v2 }
   0xa   :  { %432 = vmatpush3.bf16.msra.mxu1 %v461_v33 }
   0xb   :  { %422 = vmatpush3.bf16.msra.mxu0 %v458_v6  ;;  %433 = vmatprep.subr.bf16.mxu1 %v479_v2 }
   0xc   :  { %423 = vmatprep.subr.bf16.mxu0 %v479_v2 }
   0xe   :  { %434 = vmatpush3.bf16.msra.mxu1 %v462_v34 }
   0xf   :  { %424 = vmatpush3.bf16.msra.mxu0 %v459_v7  ;;  %435 = vmatprep.subr.bf16.mxu1 %v479_v2 }
  0x10   :  { %441 = vmatprep.subr.bf16.mxu0 %v479_v2 }
  0x12   :  { %436 = vmatpush3.bf16.msra.mxu1 %v463_v36 }
  0x81   :  { %v38_v10 = vpop.permute.xlu0 %37 }
  0x82   :  { %vm39_vm1 = vcmp.eq.s32.totalorder %v35_v9, %v38_v10  ;;  %v400_v9 = vld [vmem:[%s628_s5] ss:$0 sm:$0xff] }
  0x83   :  { %v374_v11 = vsel %vm39_vm1, 1.0, %v479_v2 }
  0x85   :  { %v44_v12 = vpop.permute.xlu0 %43 }
  0x86   :  { %v47_v13 = vsel %vm46_vm2, %v374_v11, %v44_v12 }
  0x87   :  { %v48_v14 = vpack.c.bf16 %v47_v13, %v47_v13 }
  0x89   :  { %426 = vmatmul.mubr.msk.bf16.vlgmr.msra.gmra.mrb[0].mxu0 %vm88_vm3, %v48_v14 }
  0x8a   :  { %445 = vmatprep.mubr.msk.bf16.mxu0 %vm481_vm0, %v479_v2  ;;  %442 = vmatpush3.bf16.msra.mxu0 %v464_v61 }
  0x8b   :  { %443 = vmatprep.subr.bf16.mxu0 %v479_v2 }
  0x8e   :  { %444 = vmatpush3.bf16.msra.mxu0 %v465_v62 }
 0x15c   :  { %v126_v16 = vpop.f32.mrb[0].mxu0 }
 0x15d   :  { %v127_v17 = vadd.f32 %v375_v15, %v126_v16  ;;  %v427_v18 = vpop.f32.mrb[1].mxu0 }
 0x15e   :  { %v129_v19 = vpop.f32.mrb[2].mxu0 }
 0x15f   :  { %v381_v20 = vmul.f32 -1.442695, %v127_v17  ;;  %v428_v21 = vpop.f32.mrb[3].mxu0 }
 0x161   :  { %466 = vpow2.f32 %v381_v20 }
 0x16b   :  { %v467_v22 = vpop.eup %466 }
 0x16c   :  { %v135_v23 = vadd.f32 1.0, %v467_v22 }
 0x16e   :  { %468 = vrcp.f32 %v135_v23 }
 0x178   :  { %v469_v24 = vpop.eup %468 }
 0x179   :  { %v138_v25 = vmul.f32 2.0, %v469_v24  ;;  %v140_v29 = vmul.f32 %v469_v24, %v535_v4 }
 0x17b   :  { %v382_v26 = vadd.f32 -1.0, %v138_v25 }
 0x17d   :  { %142 = vrot.lane.b32.xlu1 %v382_v26, %s482_s14 }
 0x1ef   :  { %v143_v27 = vpop.permute.xlu1 %142 }
 0x1f0   :  { %v145_v28 = vmul.f32 %v469_v24, %v143_v27 }
 0x1f2   :  { %147 = vrot.lane.b32.xlu1 %v145_v28, %s480_s0 }
 0x264   :  { %v148_v30 = vpop.permute.xlu1 %147 }
 0x265   :  { %v567_v31 = vadd.f32 %v148_v30, %v140_v29 }
 0x267   :  { %470 = vtanh.f32 %v567_v31 }
 0x271   :  { %v471_v35 = vpop.eup %470 }
 0x272   :  { %153 = vrot.lane.b32.xlu0 %v471_v35, %s482_s14 }
 0x276   :  { %161 = vrot.lane.b32.xlu0 %v535_v4, %s483_s21 }
 0x27a   :  { %258 = vrot.lane.b32.xlu0 %v535_v4, %s482_s14 }
 0x2e4   :  { %v154_v37 = vpop.permute.xlu0 %153 }
 0x2e5   :  { %v156_v38 = vmul.f32 %v469_v24, %v154_v37 }
 0x2e7   :  { %158 = vrot.lane.b32.xlu1 %v156_v38, %s480_s0 }
 0x2e8   :  { %v162_v39 = vpop.permute.xlu0 %161 }
 0x2ec   :  { %v259_v57 = vpop.permute.xlu0 %258 }
 0x359   :  { %v159_v40 = vpop.permute.xlu1 %158 }
 0x35a   :  { %v164_v41 = vsel %vm46_vm2, %v159_v40, %v162_v39  ;;  %v286_v2 = vsel %vm46_vm2, %v159_v40, %v567_v31 }
 0x35b   :  { %v165_v42 = vpack.c.bf16 %v164_v41, %v164_v41 }
 0x35d   :  { %438 = vmatmul.mubr.msk.bf16.vlgmr.msra.gmra.mrb[0].mxu1 %vm88_vm3, %v165_v42 }
 0x430   :  { %v244_v44 = vpop.f32.mrb[0].mxu1 }
 0x431   :  { %v245_v45 = vadd.f32 %v392_v43, %v244_v44  ;;  %v439_v46 = vpop.f32.mrb[1].mxu1 }
 0x432   :  { %v247_v47 = vpop.f32.mrb[2].mxu1 }
 0x433   :  { %v398_v48 = vmul.f32 -1.442695, %v245_v45  ;;  %v440_v49 = vpop.f32.mrb[3].mxu1 }
 0x435   :  { %472 = vpow2.f32 %v398_v48 }
 0x43f   :  { %v473_v50 = vpop.eup %472 }
 0x440   :  { %v253_v51 = vadd.f32 1.0, %v473_v50 }
 0x442   :  { %474 = vrcp.f32 %v253_v51 }
 0x44c   :  { %v475_v52 = vpop.eup %474 }
 0x44d   :  { %v256_v53 = vmul.f32 2.0, %v475_v52  ;;  %v261_v58 = vmul.f32 %v475_v52, %v259_v57 }
 0x44f   :  { %v399_v54 = vadd.f32 -1.0, %v256_v53 }
 0x451   :  { %263 = vrot.lane.b32.xlu1 %v399_v54, %s482_s14 }
 0x4c3   :  { %v264_v55 = vpop.permute.xlu1 %263 }
 0x4c4   :  { %v266_v56 = vmul.f32 %v475_v52, %v264_v55 }
 0x4c6   :  { %268 = vrot.lane.b32.xlu1 %v266_v56, %s480_s0 }
 0x538   :  { %v269_v59 = vpop.permute.xlu1 %268 }
 0x539   :  { %v271_v60 = vadd.f32 %v269_v59, %v261_v58 }
 0x53b   :  { %476 = vtanh.f32 %v271_v60 }
 0x545   :  { %v477_v63 = vpop.eup %476 }
 0x546   :  { %274 = vrot.lane.b32.xlu0 %v477_v63, %s482_s14 }
 0x5b8   :  { %v275_v0 = vpop.permute.xlu0 %274 }
 0x5b9   :  { %v277_v1 = vmul.f32 %v475_v52, %v275_v0 }
 0x5bb   :  { %v295_v3 = vpack.c.bf16 %v277_v1, %v277_v1  ;;  %279 = vrot.lane.b32.xlu0 %v277_v1, %s483_s21 }
 0x5bd   :  { %308 = vrot.lane.b32.xlu1 %v295_v3, %s480_s0 }
 0x5c1   :  { %283 = vrot.lane.b32.xlu1 %v271_v60, %s482_s14 }
 0x62d   :  { %v280_v5 = vpop.permute.xlu0 %279 }
 0x62e   :  { %v287_v6 = vsel %vm88_vm3, %v286_v2, %v280_v5 }
 0x62f   :  { %v309_v4 = vpop.permute.xlu1 %308 }
 0x630   :  { %446 = vmatmul.mubr.msk.bf16.vlgmr.msra.gmra.mrb[4].mxu0 %vm46_vm2, %v309_v4 }
 0x633   :  { %v284_v7 = vpop.permute.xlu1 %283 }
 0x634   :  { %v289_v8 = vsel %vm288_vm4, %v287_v6, %v284_v7 }
 0x635   :  { %294 = vst [vmem:[%s627_s7] sm:$0xff] %v289_v8 }
 0x703   :  { %v359_v10 = vpop.f32.mrb[4].mxu0 }
 0x704   :  { %v360_v11 = vadd.f32 %v400_v9, %v359_v10  ;;  %v447_v12 = vpop.f32.mrb[5].mxu0 }
 0x705   :  { %v362_v13 = vpop.f32.mrb[6].mxu0 }
 0x706   :  { %365 = vst [vmem:[%s629_s6] sm:$0xff] %v360_v11  ;;  %v448_v14 = vpop.f32.mrb[7].mxu0 }

</bundles_post_ra>
